<compile_context>
chip_gen: v7x
topology: tpu7x:2x2x1
jax: 0.10.0
libtpu: 0.0.40
codegen_flags: <defaults>
</compile_context>

<pallas_src>
import functools

import jax
import jax.numpy as jnp
from jax import lax
from jax.experimental import pallas as pl
from jax.experimental.pallas import tpu as pltpu


def _padding(kernel_size: int):
    # Matches nn.ConstantPad1d((k//2, k//2-1)) for even k (left-heavy).
    if kernel_size % 2 == 0:
        return (kernel_size // 2, kernel_size // 2 - 1)
    return (kernel_size // 2, kernel_size // 2)


def _round_up(x: int, m: int) -> int:
    return (x + m - 1) // m * m


def _vmem_limit_bytes() -> int:
    """Generation-aware scoped-VMEM limit (v7x: 64 MiB physical, others: 128)."""
    cap = 64 * 1024 * 1024  # conservative default if the query fails
    try:
        cap = int(pltpu.get_tpu_info().vmem_capacity_bytes)
    except Exception:
        pass
    return 40 * 1024 * 1024 if cap <= 64 * 1024 * 1024 else 48 * 1024 * 1024


def _auto_block_b(B, T, C_in, C_b, F4p, k1, y_bytes, budget_bytes):
    """Largest batch tile whose working set fits the budget, keeping >=2 steps."""
    best = 1
    for bb in range(1, B + 1):
        if B % bb:
            continue
        if B >= 2 and B // bb < 2:
            continue  # keep grid >= 2 for pipelining / v7x 2-TC sharding
        rows = bb * T
        work = (2 * bb * C_in * T * 4            # x blocks (double buffered)
                + 2 * rows * F4p * y_bytes       # y_pre blocks (double buffered)
                + 2 * rows * F4p * 4             # f32 accumulator / pass-2 temp
                + 4 * bb * (T + k1) * C_b * 4)   # xb / xp / pool / chunk temps
        if work <= budget_bytes:
            best = bb
    return best


# --------------------------------------------------------------------------
# Pass 1: bottleneck + (conv1 | conv2 | conv3 | maxpool->conv) via tap groups
# --------------------------------------------------------------------------
def _conv_pass_kernel(x_ref, wbn_ref, bbn_ref, wm_ref, y_ref, stats_ref, *,
                      k1, group_taps):
    # x_ref:    (bB, C_in, T)        f32   (native layout, no XLA transpose)
    # wbn_ref:  (C_in, C_b)          compute dtype
    # bbn_ref:  (1, C_b)             f32
    # wm_ref:   ((k1+1)*C_b, F4p)    compute dtype, merged conv weights
    # y_ref:    (bB, T, F4p)         bf16/f32, pre-BN output (lane dense)
    # stats_ref:(1, 2, F4p)          f32, per-tile [sum, sum_sq] per channel
    x = x_ref[...]
    bB, C_in, T = x.shape
    cdt = wbn_ref.dtype
    C_b = wbn_ref.shape[1]
    F4p = wm_ref.shape[1]

    # ---- in-kernel layout change: time -> rows, channels -> lanes (XLU) ----
    xt = jnp.transpose(x, (0, 2, 1)).reshape(bB * T, C_in)

    # ---- bottleneck 1x1 conv (+ bias), f32 accumulation on the MXU ----
    xb = jnp.dot(xt.astype(cdt), wbn_ref[...],
                 preferred_element_type=jnp.float32)
    xb = (xb + bbn_ref[...]).astype(cdt).reshape(bB, T, C_b)

    # ---- one shared zero-padded time buffer for all three "same" convs ----
    # TODO(synk): on v5e keep this region in f32 (no native bf16 VPU there).
    pad_l, pad_r = _padding(k1)
    parts = []
    if pad_l:
        parts.append(jnp.zeros((bB, pad_l, C_b), cdt))
    parts.append(xb)
    if pad_r:
        parts.append(jnp.zeros((bB, pad_r, C_b), cdt))
    xp = jnp.concatenate(parts, axis=1) if len(parts) > 1 else xb

    # ---- maxpool(kernel=3, stride=1, padding=1) with -inf padding ----
    neg = jnp.full((bB, 1, C_b), -jnp.inf, cdt)
    xm = jnp.concatenate([neg, xb, neg], axis=1)            # (bB, T+2, C_b)
    xpool = jnp.maximum(jnp.maximum(xm[:, 0:T, :], xm[:, 1:T + 1, :]),
                        xm[:, 2:T + 2, :])

    # ---- tap-group accumulation (no full im2col stack materialized) ----
    n_taps = k1 + 1                                         # + maxpool "tap"
    acc = jnp.zeros((bB * T, F4p), jnp.float32)
    for g0 in range(0, n_taps, group_taps):                 # static, few iters
        g1 = min(g0 + group_taps, n_taps)
        pieces = [xp[:, j:j + T, :] if j < k1 else xpool for j in range(g0, g1)]
        chunk = pieces[0] if len(pieces) == 1 else jnp.concatenate(pieces, axis=2)
        chunk = chunk.reshape(bB * T, (g1 - g0) * C_b)
        acc = acc + jnp.dot(chunk, wm_ref[g0 * C_b:g1 * C_b, :],
                            preferred_element_type=jnp.float32)

    y_ref[...] = acc.reshape(bB, T, F4p).astype(y_ref.dtype)

    # ---- per-tile BatchNorm partial statistics (kept in f32) ----
    s1 = jnp.sum(acc, axis=0, keepdims=True)                # (1, F4p)
    s2 = jnp.sum(acc * acc, axis=0, keepdims=True)          # (1, F4p)
    stats_ref[...] = jnp.stack([s1, s2], axis=1)            # (1, 2, F4p)


# --------------------------------------------------------------------------
# Pass 2: precomputed BN scale/shift + ReLU, writes (B, 4F, T) directly
# --------------------------------------------------------------------------
def _bn_relu_kernel(y_ref, ss_ref, o_ref, *, f4):
    # y_ref: (bB, T, F4p)  bf16/f32   ss_ref: (2, F4p) f32 [scale; shift]
    # o_ref: (bB, F4, T)   f32
    y = y_ref[...].astype(jnp.float32)
    scale = ss_ref[0:1, :][None]                            # (1, 1, F4p)
    shift = ss_ref[1:2, :][None]
    z = jnp.maximum(y * scale + shift, 0.0)                 # (bB, T, F4p)
    zt = jnp.transpose(z, (0, 2, 1))                        # (bB, F4p, T), XLU
    o_ref[...] = zt[:, :f4, :]                              # drop lane padding


# --------------------------------------------------------------------------
# Wrapper (parameter packing glue only — no activation-sized XLA ops)
# --------------------------------------------------------------------------
def _build_merged_weight(params, f4p, compute_dtype):
    """Pack conv1/conv2/conv3/convpool into one ((k1+1)*C_b, F4p) matrix."""
    W1, W2, W3, Wp = params["W1"], params["W2"], params["W3"], params["Wp"]
    F, C_b, k1 = W1.shape
    pad_l1 = _padding(k1)[0]
    Wm = jnp.zeros(((k1 + 1) * C_b, f4p), jnp.float32)

    def put(Wm, W, col):
        k = W.shape[2]
        pad_l = _padding(k)[0]
        for j in range(k):
            # Align tap j of a shorter kernel into the k1-tap grid so that
            # "same"-padding semantics are preserved for every branch.
            row = j + pad_l1 - pad_l
            Wm = Wm.at[row * C_b:(row + 1) * C_b,
                       col * F:(col + 1) * F].set(W[:, :, j].T)
        return Wm

    Wm = put(Wm, W1, 0)
    Wm = put(Wm, W2, 1)
    Wm = put(Wm, W3, 2)
    Wm = Wm.at[k1 * C_b:(k1 + 1) * C_b, 3 * F:4 * F].set(Wp[:, :, 0].T)
    return Wm.astype(compute_dtype)


def inception_block_forward(x_nct, params, *, block_b=None,
                            compute_dtype=jnp.bfloat16, target_k=256):
    """x_nct: (B, C_in, T) f32  ->  (B, 4*n_filters, T) f32."""
    B, C_in, T = x_nct.shape
    F, C_b, k1 = params["W1"].shape
    F4 = 4 * F
    F4p = _round_up(F4, 128)                # lane-dense intermediate / stats
    n_taps = k1 + 1
    Kc = n_taps * C_b
    # tap-group size so that K = group*C_b ~ MXU contraction width (256)
    group_taps = max(1, min(n_taps, target_k // max(C_b, 1)))

    is_bf16 = jnp.dtype(compute_dtype) == jnp.dtype(jnp.bfloat16)
    y_dtype = jnp.bfloat16 if is_bf16 else jnp.float32

    vmem_limit = _vmem_limit_bytes()
    if block_b is None:
        block_b = _auto_block_b(B, T, C_in, C_b, F4p, k1,
                                jnp.dtype(y_dtype).itemsize,
                                vmem_limit // 2)
    assert B % block_b == 0, "block_b must divide B"
    nB = B // block_b

    # parameter packing / dtype casts (tiny)
    wbn_t = params["Wbn"][:, :, 0].T.astype(compute_dtype)        # (Cin, C_b)
    bbn2 = params["bbn"][None, :].astype(jnp.float32)             # (1, C_b)
    wm = _build_merged_weight(params, F4p, compute_dtype)         # (Kc, F4p)
    # conv biases b1/b2/b3/bp are intentionally not passed: training-mode BN
    # cancels any constant per-channel offset added after the convolutions.

    cparams = pltpu.CompilerParams(dimension_semantics=("parallel",),
                                   vmem_limit_bytes=vmem_limit)

    # ---- pass 1: conv branches via tap-group matmuls + partial BN stats ----
    y_pre, partial = pl.pallas_call(
        functools.partial(_conv_pass_kernel, k1=k1, group_taps=group_taps),
        out_shape=(jax.ShapeDtypeStruct((B, T, F4p), y_dtype),
                   jax.ShapeDtypeStruct((nB, 2, F4p), jnp.float32)),
        grid=(nB,),
        in_specs=[
            pl.BlockSpec((block_b, C_in, T), lambda b: (b, 0, 0)),
            pl.BlockSpec((C_in, C_b), lambda b: (0, 0)),
            pl.BlockSpec((1, C_b), lambda b: (0, 0)),
            pl.BlockSpec((Kc, F4p), lambda b: (0, 0)),
        ],
        out_specs=(pl.BlockSpec((block_b, T, F4p), lambda b: (b, 0, 0)),
                   pl.BlockSpec((1, 2, F4p), lambda b: (b, 0, 0))),
        compiler_params=cparams,
    )(x_nct, wbn_t, bbn2, wm)

    # ---- tiny global BN stat reduction + scale/shift, hoisted into JAX ----
    cnt = float(B * T)
    tot = jnp.sum(partial, axis=0)                                # (2, F4p)
    mean = tot[0] / cnt
    var = tot[1] / cnt - mean * mean                              # biased var
    gamma = jnp.pad(params["gamma"].astype(jnp.float32), (0, F4p - F4))
    beta = jnp.pad(params["beta"].astype(jnp.float32), (0, F4p - F4))
    scale = gamma * lax.rsqrt(var + 1e-5)
    shift = beta - mean * scale
    ss = jnp.stack([scale, shift], axis=0).astype(jnp.float32)    # (2, F4p)

    # ---- pass 2: scale/shift + ReLU, writes (B, 4F, T) directly ----
    out = pl.pallas_call(
        functools.partial(_bn_relu_kernel, f4=F4),
        out_shape=jax.ShapeDtypeStruct((B, F4, T), jnp.float32),
        grid=(nB,),
        in_specs=[pl.BlockSpec((block_b, T, F4p), lambda b: (b, 0, 0)),
                  pl.BlockSpec((2, F4p), lambda b: (0, 0))],
        out_specs=pl.BlockSpec((block_b, F4, T), lambda b: (b, 0, 0)),
        compiler_params=cparams,
    )(y_pre, ss)
    return out


# --------------------------------------------------------------------------
# Pure-JAX reference mirroring the PyTorch forward (for verification)
# --------------------------------------------------------------------------
def reference_forward(x, p):
    def conv1d(xx, W, b, pad):
        y = lax.conv_general_dilated(xx, W, window_strides=(1,), padding=[pad],
                                     dimension_numbers=("NCH", "OIH", "NCH"))
        return y + b[None, :, None]

    xb = conv1d(x, p["Wbn"], p["bbn"], (0, 0))
    y1 = conv1d(xb, p["W1"], p["b1"], _padding(p["W1"].shape[2]))
    y2 = conv1d(xb, p["W2"], p["b2"], _padding(p["W2"].shape[2]))
    y3 = conv1d(xb, p["W3"], p["b3"], _padding(p["W3"].shape[2]))
    xpool = lax.reduce_window(xb, -jnp.inf, lax.max, (1, 1, 3), (1, 1, 1),
                              [(0, 0), (0, 0), (1, 1)])
    y4 = conv1d(xpool, p["Wp"], p["bp"], (0, 0))
    y = jnp.concatenate([y1, y2, y3, y4], axis=1)
    mean = jnp.mean(y, axis=(0, 2), keepdims=True)
    var = jnp.mean(jnp.square(y - mean), axis=(0, 2), keepdims=True)
    yn = (y - mean) * lax.rsqrt(var + 1e-5)
    yn = yn * p["gamma"][None, :, None] + p["beta"][None, :, None]
    return jnp.maximum(yn, 0.0)


if __name__ == "__main__":
    # small config: n_inputs=8, bottleneck=4, n_filters=4, kernel_size=8 -> [8,4,2]
    B, C_in, T = 2, 8, 16
    C_b, F, K = 4, 4, 8
    ks = [K // 2 ** i for i in range(3)]

    key = jax.random.PRNGKey(0)
    keys = jax.random.split(key, 13)
    params = {
        "Wbn": 0.3 * jax.random.normal(keys[0], (C_b, C_in, 1), jnp.float32),
        "bbn": 0.1 * jax.random.normal(keys[1], (C_b,), jnp.float32),
        "W1": 0.3 * jax.random.normal(keys[2], (F, C_b, ks[0]), jnp.float32),
        "b1": 0.1 * jax.random.normal(keys[3], (F,), jnp.float32),
        "W2": 0.3 * jax.random.normal(keys[4], (F, C_b, ks[1]), jnp.float32),
        "b2": 0.1 * jax.random.normal(keys[5], (F,), jnp.float32),
        "W3": 0.3 * jax.random.normal(keys[6], (F, C_b, ks[2]), jnp.float32),
        "b3": 0.1 * jax.random.normal(keys[7], (F,), jnp.float32),
        "Wp": 0.3 * jax.random.normal(keys[8], (F, C_b, 1), jnp.float32),
        "bp": 0.1 * jax.random.normal(keys[9], (F,), jnp.float32),
        # exercise the affine BN path (PyTorch default init is gamma=1, beta=0)
        "gamma": 1.0 + 0.1 * jax.random.normal(keys[10], (4 * F,), jnp.float32),
        "beta": 0.1 * jax.random.normal(keys[11], (4 * F,), jnp.float32),
    }

    x = jax.random.normal(keys[12], (B, C_in, T), jnp.float32)
    ref = jax.block_until_ready(reference_forward(x, params))

    # exact-semantics check with f32 matmuls / f32 intermediate
    out_f32 = jax.block_until_ready(
        inception_block_forward(x, params, compute_dtype=jnp.float32))
    assert out_f32.shape == (B, 4 * F, T), out_f32.shape
    assert jnp.allclose(out_f32, ref, rtol=1e-3, atol=1e-3), \
        f"f32 path: max abs diff = {jnp.max(jnp.abs(out_f32 - ref))}"

    # default (performance) path: bf16 MXU operands + bf16 intermediate,
    # f32 accumulation and f32 BN statistics
    out = jax.block_until_ready(inception_block_forward(x, params))
    assert out.shape == (B, 4 * F, T), out.shape
    assert jnp.allclose(out, ref, rtol=4e-2, atol=4e-2), \
        f"bf16 path: max abs diff = {jnp.max(jnp.abs(out - ref))}"

    print("KERNEL_OK")
</pallas_src>

<mosaic_0001>
module attributes {stable_mosaic.version = 11 : i64} {
  func.func @_conv_pass_kernel(%arg0: i32, %arg1: memref<1x8x16xf32, #tpu.memory_space<vmem>>, %arg2: memref<8x4xf32, #tpu.memory_space<vmem>>, %arg3: memref<1x4xf32, #tpu.memory_space<vmem>>, %arg4: memref<36x128xf32, #tpu.memory_space<vmem>>, %arg5: memref<1x16x128xf32, #tpu.memory_space<vmem>>, %arg6: memref<1x2x128xf32, #tpu.memory_space<vmem>>) attributes {dimension_semantics = [#tpu.dimension_semantics<parallel>], iteration_bounds = array<i64: 2>, scalar_prefetch = 0 : i64, scratch_operands = 0 : i64, tpu.core_type = #tpu.core_type<tc>, window_params = [{transform_indices = @transform_0, window_bounds = array<i64: 1, 8, 16>}, {pipeline_mode = #tpu.pipeline_mode<synchronous>, transform_indices = @transform_1, window_bounds = array<i64: 8, 4>}, {pipeline_mode = #tpu.pipeline_mode<synchronous>, transform_indices = @transform_2, window_bounds = array<i64: 1, 4>}, {pipeline_mode = #tpu.pipeline_mode<synchronous>, transform_indices = @transform_3, window_bounds = array<i64: 36, 128>}, {transform_indices = @transform_4, window_bounds = array<i64: 1, 16, 128>}, {transform_indices = @transform_5, window_bounds = array<i64: 1, 2, 128>}]} {
    %c0 = arith.constant 0 : index
    %c0_0 = arith.constant 0 : index
    %c0_1 = arith.constant 0 : index
    %0 = vector.load %arg1[%c0, %c0_0, %c0_1] : memref<1x8x16xf32, #tpu.memory_space<vmem>>, vector<1x8x16xf32>
    %1 = tpu.transpose %0, [0, 2, 1] : vector<1x8x16xf32> -> vector<1x16x8xf32>
    %2 = vector.shape_cast %1 : vector<1x16x8xf32> to vector<16x8xf32>
    %c0_2 = arith.constant 0 : index
    %c0_3 = arith.constant 0 : index
    %3 = vector.load %arg2[%c0_2, %c0_3] : memref<8x4xf32, #tpu.memory_space<vmem>>, vector<8x4xf32>
    %cst = arith.constant dense<0.000000e+00> : vector<16x4xf32>
    %4 = tpu.matmul %2, %3, %cst {dimension_numbers = #tpu.dot_dimension_numbers<[1], [0], [0], [1], [0, 0, 1, 1], [], []>} : vector<16x8xf32>, vector<8x4xf32>, vector<16x4xf32> -> vector<16x4xf32>
    %c0_4 = arith.constant 0 : index
    %c0_5 = arith.constant 0 : index
    %5 = vector.load %arg3[%c0_4, %c0_5] : memref<1x4xf32, #tpu.memory_space<vmem>>, vector<1x4xf32>
    %6 = vector.broadcast %5 : vector<1x4xf32> to vector<16x4xf32>
    %7 = arith.addf %4, %6 : vector<16x4xf32>
    %8 = vector.shape_cast %7 : vector<16x4xf32> to vector<1x16x4xf32>
    %cst_6 = arith.constant 0.000000e+00 : f32
    %9 = vector.broadcast %cst_6 : f32 to vector<1x4x4xf32>
    %cst_7 = arith.constant 0.000000e+00 : f32
    %10 = vector.broadcast %cst_7 : f32 to vector<1x3x4xf32>
    %11 = tpu.concatenate %9, %8, %10 in 1 : vector<1x4x4xf32>, vector<1x16x4xf32>, vector<1x3x4xf32> -> vector<1x23x4xf32>
    %cst_8 = arith.constant 0xFF800000 : f32
    %12 = vector.broadcast %cst_8 : f32 to vector<1x1x4xf32>
    %13 = tpu.concatenate %12, %8, %12 in 1 : vector<1x1x4xf32>, vector<1x16x4xf32>, vector<1x1x4xf32> -> vector<1x18x4xf32>
    %14 = vector.extract_strided_slice %13 {offsets = [0, 0, 0], sizes = [1, 16, 4], strides = [1, 1, 1]} : vector<1x18x4xf32> to vector<1x16x4xf32>
    %15 = vector.extract_strided_slice %13 {offsets = [0, 1, 0], sizes = [1, 16, 4], strides = [1, 1, 1]} : vector<1x18x4xf32> to vector<1x16x4xf32>
    %16 = arith.maximumf %14, %15 : vector<1x16x4xf32>
    %17 = vector.extract_strided_slice %13 {offsets = [0, 2, 0], sizes = [1, 16, 4], strides = [1, 1, 1]} : vector<1x18x4xf32> to vector<1x16x4xf32>
    %18 = arith.maximumf %16, %17 : vector<1x16x4xf32>
    %cst_9 = arith.constant 0.000000e+00 : f32
    %19 = vector.broadcast %cst_9 : f32 to vector<16x128xf32>
    %20 = vector.extract_strided_slice %11 {offsets = [0, 0, 0], sizes = [1, 16, 4], strides = [1, 1, 1]} : vector<1x23x4xf32> to vector<1x16x4xf32>
    %21 = vector.extract_strided_slice %11 {offsets = [0, 1, 0], sizes = [1, 16, 4], strides = [1, 1, 1]} : vector<1x23x4xf32> to vector<1x16x4xf32>
    %22 = vector.extract_strided_slice %11 {offsets = [0, 2, 0], sizes = [1, 16, 4], strides = [1, 1, 1]} : vector<1x23x4xf32> to vector<1x16x4xf32>
    %23 = vector.extract_strided_slice %11 {offsets = [0, 3, 0], sizes = [1, 16, 4], strides = [1, 1, 1]} : vector<1x23x4xf32> to vector<1x16x4xf32>
    %24 = vector.extract_strided_slice %11 {offsets = [0, 4, 0], sizes = [1, 16, 4], strides = [1, 1, 1]} : vector<1x23x4xf32> to vector<1x16x4xf32>
    %25 = vector.extract_strided_slice %11 {offsets = [0, 5, 0], sizes = [1, 16, 4], strides = [1, 1, 1]} : vector<1x23x4xf32> to vector<1x16x4xf32>
    %26 = vector.extract_strided_slice %11 {offsets = [0, 6, 0], sizes = [1, 16, 4], strides = [1, 1, 1]} : vector<1x23x4xf32> to vector<1x16x4xf32>
    %27 = vector.extract_strided_slice %11 {offsets = [0, 7, 0], sizes = [1, 16, 4], strides = [1, 1, 1]} : vector<1x23x4xf32> to vector<1x16x4xf32>
    %28 = tpu.concatenate %20, %21, %22, %23, %24, %25, %26, %27, %18 in 2 : vector<1x16x4xf32>, vector<1x16x4xf32>, vector<1x16x4xf32>, vector<1x16x4xf32>, vector<1x16x4xf32>, vector<1x16x4xf32>, vector<1x16x4xf32>, vector<1x16x4xf32>, vector<1x16x4xf32> -> vector<1x16x36xf32>
    %29 = vector.shape_cast %28 : vector<1x16x36xf32> to vector<16x36xf32>
    %c0_10 = arith.constant 0 : index
    %c0_11 = arith.constant 0 : index
    %30 = vector.load %arg4[%c0_10, %c0_11] : memref<36x128xf32, #tpu.memory_space<vmem>>, vector<36x128xf32>
    %cst_12 = arith.constant dense<0.000000e+00> : vector<16x128xf32>
    %31 = tpu.matmul %29, %30, %cst_12 {dimension_numbers = #tpu.dot_dimension_numbers<[1], [0], [0], [1], [0, 0, 1, 1], [], []>} : vector<16x36xf32>, vector<36x128xf32>, vector<16x128xf32> -> vector<16x128xf32>
    %32 = arith.addf %19, %31 : vector<16x128xf32>
    %33 = vector.shape_cast %32 : vector<16x128xf32> to vector<1x16x128xf32>
    %c0_13 = arith.constant 0 : index
    %c0_14 = arith.constant 0 : index
    %c0_15 = arith.constant 0 : index
    %34 = vector.load %arg5[%c0_13, %c0_14, %c0_15] : memref<1x16x128xf32, #tpu.memory_space<vmem>>, vector<1x16x128xf32>
    tpu.vector_store %arg5[%c0_13, %c0_14, %c0_15], %33 {strides = array<i32>} : memref<1x16x128xf32, #tpu.memory_space<vmem>>, vector<1x16x128xf32>,
    %cst_16 = arith.constant dense<0.000000e+00> : vector<128xf32>
    %35 = vector.multi_reduction <add>, %32, %cst_16 [0] : vector<16x128xf32> to vector<128xf32>
    %36 = vector.shape_cast %35 : vector<128xf32> to vector<1x128xf32>
    %37 = arith.mulf %32, %32 : vector<16x128xf32>
    %cst_17 = arith.constant dense<0.000000e+00> : vector<128xf32>
    %38 = vector.multi_reduction <add>, %37, %cst_17 [0] : vector<16x128xf32> to vector<128xf32>
    %39 = vector.shape_cast %38 : vector<128xf32> to vector<1x128xf32>
    %40 = vector.shape_cast %36 : vector<1x128xf32> to vector<1x1x128xf32>
    %41 = vector.shape_cast %39 : vector<1x128xf32> to vector<1x1x128xf32>
    %42 = tpu.concatenate %40, %41 in 1 : vector<1x1x128xf32>, vector<1x1x128xf32> -> vector<1x2x128xf32>
    %c0_18 = arith.constant 0 : index
    %c0_19 = arith.constant 0 : index
    %c0_20 = arith.constant 0 : index
    %43 = vector.load %arg6[%c0_18, %c0_19, %c0_20] : memref<1x2x128xf32, #tpu.memory_space<vmem>>, vector<1x2x128xf32>
    tpu.vector_store %arg6[%c0_18, %c0_19, %c0_20], %42 {strides = array<i32>} : memref<1x2x128xf32, #tpu.memory_space<vmem>>, vector<1x2x128xf32>,
    return
  }
  func.func @transform_0(%arg0: i32) -> (i32, i32, i32) {
    %c0_i32 = arith.constant 0 : i32
    %c0_i32_0 = arith.constant 0 : i32
    %c0_i32_1 = arith.constant 0 : i32
    return %arg0, %c0_i32, %c0_i32_0 : i32, i32, i32
  }
  func.func @transform_1(%arg0: i32) -> (i32, i32) {
    %c0_i32 = arith.constant 0 : i32
    %c0_i32_0 = arith.constant 0 : i32
    %c0_i32_1 = arith.constant 0 : i32
    return %c0_i32, %c0_i32_0 : i32, i32
  }
  func.func @transform_2(%arg0: i32) -> (i32, i32) {
    %c0_i32 = arith.constant 0 : i32
    %c0_i32_0 = arith.constant 0 : i32
    %c0_i32_1 = arith.constant 0 : i32
    return %c0_i32, %c0_i32_0 : i32, i32
  }
  func.func @transform_3(%arg0: i32) -> (i32, i32) {
    %c0_i32 = arith.constant 0 : i32
    %c0_i32_0 = arith.constant 0 : i32
    %c0_i32_1 = arith.constant 0 : i32
    return %c0_i32, %c0_i32_0 : i32, i32
  }
  func.func @transform_4(%arg0: i32) -> (i32, i32, i32) {
    %c0_i32 = arith.constant 0 : i32
    %c0_i32_0 = arith.constant 0 : i32
    %c0_i32_1 = arith.constant 0 : i32
    return %arg0, %c0_i32, %c0_i32_0 : i32, i32, i32
  }
  func.func @transform_5(%arg0: i32) -> (i32, i32, i32) {
    %c0_i32 = arith.constant 0 : i32
    %c0_i32_0 = arith.constant 0 : i32
    %c0_i32_1 = arith.constant 0 : i32
    return %arg0, %c0_i32, %c0_i32_0 : i32, i32, i32
  }
}

</mosaic_0001>

<bundles_post_ra>
// kernel: tpu_custom_call.1
= control target key start
LH: loop header
LB: loop body
LE: loop exit
PB: predicated region body
PF: predicated region fallthrough
CT: control target
= control target key end

     0   :  { %11 = vsyncpa [#allocation3], 0  ;;  %s1452_s0 = inlined_call_operand.hbm [shape: f32[2,8,16], index: 0, kind: input, shape index: {}]   ;;  %s1453_s1 = inlined_call_operand.vmem [shape: f32[8,4], index: 1, kind: input, shape index: {}]   ;;  %s1454_s2 = inlined_call_operand.vmem [shape: f32[1,4], index: 2, kind: input, shape index: {}]   ;;  %s1455_s3 = inlined_call_operand.hbm [shape: f32[36,128], index: 3, kind: input, shape index: {}]   ;;  %s1456_s4 = inlined_call_operand.hbm [shape: f32[2,16,128], index: 4, kind: output, shape index: {0}]   ;;  %s1457_s5 = inlined_call_operand.hbm [shape: f32[2,2,128], index: 5, kind: output, shape index: {1}]  }
   0x1   :  { %13 = vsyncpa [#allocation3 + $0x1], 0 }
   0x2   :  { %14 = vsyncpa [#allocation6], 0 }
   0x3   :  { %15 = vsyncpa [#allocation4], 0 }
   0x4   :  { %17 = vsyncpa [#allocation4 + $0x1], 0 }
   0x5   :  { %18 = vsyncpa [#allocation9], 0 }
   0x6   :  { %20 = vsyncpa [#allocation9 + $0x1], 0  ;;  %s1143_s18 = smov 0   ;;  %s1145_s19 = smov 0  }
   0x7   :  { %s1147_s20 = smov 0   ;;  %s1149_s21 = smov 0  }
   0x8 LB: > { %s1164_s22 = sadd.s32 4294967295, %s1096_s21   ;;  %s801_s23 = sadd.s32 4294967294, %s1096_s21   ;;  %s1096_s21 = sphi %s1149_s21, %s1477_s21   ;;  %s1092_s20 = sphi %s1147_s20, %s1476_s20   ;;  %s1088_s19 = sphi %s1145_s19, %s1475_s19   ;;  %s1084_s18 = sphi %s1143_s18, %s1474_s18  }
   0x9   : > { %p46_p0 = scmp.ne.s32.totalorder %s1088_s19, %s1084_s18  ;;  %p1458_p1 = scmp.eq.s32.totalorder %s1164_s22, 0 }
   0xa   : > { %p139_p3 = scmp.eq.s32.totalorder %s801_s23, 1  ;;  %p802_p5 = scmp.ge.s32.totalorder %s1096_s21, 1 }
   0xb   : > { %p1173_p4 = por %p1458_p1, %p46_p0  ;;  %p172_p7 = scmp.lt.s32.totalorder %s1096_s21, 3 }
   0xc   : > { %p1178_p6 = por %p139_p3, %p46_p0  ;;  %s1098_s27 = smov [#allocation5]  }
   0xd   : > { %s1461_s24 = scalar_select %p1173_p4, 1, 0 }
   0xe   : > { %s1462_s25 = scalar_select %p1178_p6, 1, 0 }
   0xf   : > { %p1183_p8 = pnand %p802_p5, %p172_p7  ;;  %s190_s28 = sshll.u32 %s1098_s27, 4  ;;  %s1187_s28 = int_to_ptr.vmem [resolvable:$true] %s190_s28 }
  0x10   : > { %s1199_s30 = sadd.s32 1, %s1096_s21   ;;  %s33_s6 = sadd.s32 1, %s1092_s20 }
  0x11   : > { %s1463_s26 = scalar_select %p1183_p8, 1, 0 }
  0x12   : > { %p872_p9 = pneg %p1183_p8  ;;  %s30_s7 = ssub.s32 %s1096_s21, %s1199_s30 }
  0x13   : > { %s936_s10 = scalar_lea.hbm %s1455_s3, 640 }
  0x14   : > { %p1194_p11 = pnand %p872_p9, %p1458_p1  ;;  %p937_p12 = scmp.ne.s32.totalorder %s1455_s3, %s936_s10 }
  0x15   : > { %p943_p5 = scmp.lt.u32.totalorder %s936_s10, %s1455_s3 }
  0x16   : > { %p938_p13 = pneg %p1194_p11 }
  0x18   : > { %p939_p0 = pnand %p938_p13, %p937_p12 }
  0x1a   : > { %p940_p3 = pneg %p939_p0 }
  0x1c   : > { %p945_p7 = pnand %p943_p5, %p940_p3 }
  0x1e   : > { %948 = shalt.err (!%p945_p7)
}
  0x1f   : > { %s949_s15 = scalar_lea.vmem %s1187_s28, 640  ;;  %p957_p2 = scmp.lt.s32.totalorder %s1187_s28, %s1187_s28 }
  0x20   : > { %p950_p9 = scmp.ne.s32.totalorder %s1187_s28, %s949_s15  ;;  %p958_p6 = scmp.lt.s32.totalorder %s949_s15, %s949_s15 }
  0x22   : > { %p952_p10 = pnand %p950_p9, %p938_p13  ;;  %p959_p4 = por %p958_p6, %p957_p2 }
  0x24   : > { %p953_p1 = pneg %p952_p10 }
  0x26   : > { %p960_p8 = pnand %p959_p4, %p953_p1 }
  0x28   : > { %963 = shalt.err (!%p960_p8)
}
  0x29   : > { %s1099_s16 = smov 128   ;;  %s1100_s17 = smov 8  }
  0x2a   : > { %875 = dma.hbm_to_vmem [thread:$0]  (!%p1194_p11), %s1455_s3, 640, %s1187_s28, [#allocation6], %s1099_s16, %s1099_s16, %s1100_s17  }
  0x2b   : > { %p31_p2 = scmp.eq.s32.totalorder %s30_s7, 0  ;;  %p40_p1 = scmp.ne.s32.totalorder %s1092_s20, %s1088_s19 }
  0x2c   : > { %p41_p4 = scmp.eq.s32.totalorder %s1096_s21, 0  ;;  %p888_p6 = scmp.lt.s32.totalorder %s1096_s21, 2 }
  0x2d   : > { %s1230_s8 = scalar_select %p31_p2, %s1092_s20, %s33_s6  }
  0x2e   : > { %p42_p8 = por %p41_p4, %p40_p1  ;;  %p1465_p10 = scmp.eq.s32.totalorder %s1164_s22, 1 }
  0x2f   : > { %s204_s10 = sand.u32 1, %s1092_s20   ;;  %s806_s11 = sshll.u32 %s1096_s21, 7 }
  0x30   : > { %p1234_p12 = por %p1465_p10, %p40_p1  ;;  %s805_s12 = sshll.u32 %s204_s10, 3 }
  0x31   : > { %s1243_s14 = scalar_lea.hbm %s1452_s0, %s806_s11  ;;  %s208_s28 = scalar_lea.vmem [#allocation2], %s805_s12 }
  0x32   : > { %s215_s6 = sshll.u32 %s208_s28, 4  ;;  %p1245_p11 = pnand %p888_p6, %p42_p8  ;;  %s1249_s6 = int_to_ptr.vmem [resolvable:$true] %s215_s6 }
  0x33   : > { %s205_s15 = scalar_lea.sflag [#allocation3], %s204_s10  ;;  %s964_s16 = scalar_lea.hbm %s1243_s14, 128 }
  0x34   : > { %p965_p13 = scmp.ne.s32.totalorder %s1243_s14, %s964_s16  ;;  %p966_p0 = pneg %p1245_p11 }
  0x35   : > { %s969_s27 = scalar_lea.hbm %s1452_s0, 256  ;;  %p970_p7 = scmp.lt.u32.totalorder %s1243_s14, %s1452_s0 }
  0x36   : > { %p967_p3 = pnand %p966_p0, %p965_p13  ;;  %p971_p9 = scmp.lt.u32.totalorder %s969_s27, %s964_s16 }
  0x37   : > { %p973_p1 = scmp.lt.u32.totalorder %s964_s16, %s1243_s14 }
  0x38   : > { %p968_p5 = pneg %p967_p3  ;;  %p972_p2 = por %p971_p9, %p970_p7 }
  0x3a   : > { %p974_p4 = por %p973_p1, %p972_p2 }
  0x3c   : > { %p975_p6 = pnand %p974_p4, %p968_p5 }
  0x3e   : > { %978 = shalt.err (!%p975_p6)
}
  0x3f   : > { %s979_s10 = scalar_lea.vmem %s1249_s6, 128  ;;  %s1101_s29 = smov [#allocation2]  }
  0x40   : > { %p980_p8 = scmp.ne.s32.totalorder %s1249_s6, %s979_s10  ;;  %s984_s13 = sshll.u32 %s1101_s29, 4  ;;  %s985_s13 = int_to_ptr.vmem [resolvable:$false] %s984_s13 }
  0x41   : > { %s986_s28 = scalar_lea.vmem %s985_s13, 256  ;;  %p987_p3 = scmp.lt.s32.totalorder %s1249_s6, %s985_s13 }
  0x42   : > { %p982_p10 = pnand %p980_p8, %p966_p0  ;;  %p988_p7 = scmp.lt.s32.totalorder %s986_s28, %s979_s10 }
  0x44   : > { %p983_p13 = pneg %p982_p10  ;;  %p989_p9 = por %p988_p7, %p987_p3 }
  0x46   : > { %p990_p2 = pnand %p989_p9, %p983_p13 }
  0x48   : > { %993 = shalt.err (!%p990_p2)
}
  0x49   : > { %879 = dma.hbm_to_vmem [thread:$0]  (!%p1245_p11), %s1243_s14, 128, %s1249_s6, %s205_s15  }
  0x4a   : > { %p1468_p5 = scmp.ne.s32.totalorder %s1463_s26, 0 }
  0x4b   : > { %s1279_s16 = sand.u32 (!%p1468_p5), 1, %s1088_s19   ;;  %p1469_p0 = scmp.ne.s32.totalorder (!%p1468_p5), %s1461_s24, 0 }
  0x4c   : > { %224 = sbr.rel (%p1468_p5) target bundleno = 865 (0x361), region = 36  ;;  %s808_s17 = sshll.u32 (!%p1468_p5), %s1279_s16, 3 }
  0x4d   : > { %s227_s23 = scalar_lea.sflag (!%p1468_p5), [#allocation3], %s1279_s16  ;;  %s230_s27 = scalar_lea.vmem (!%p1468_p5), [#allocation2], %s808_s17 }
  0x53   : > { %1067 = dma.done.wait (%p1469_p0), %s227_s23, 128  }
  0x54   : > { %1069 = vsyncadd (%p1469_p0), %s227_s23, 4294967168  ;;  %p1470_p1 = scmp.eq.s32.totalorder %s1164_s22, 0 }
  0x56   : > { %1071 = dma.done.wait (%p1470_p1), [#allocation6], 640   ;;  %p1471_p11 = pmov %p1470_p1 }
  0x57   : > { %v266_v0 = vld [vmem:[%s230_s27] sm:$0xff]  ;;  %vm307_vm0 = vcmask 64512   ;;  %vm391_vm1 = vcmask 1043456   ;;  %vm400_vm2 = vcmask 1040384   ;;  %vm411_vm3 = vcmask 1046528   ;;  %s1102_s7 = smov 4  }
  0x58   : > { %1073 = vsyncadd (%p1471_p11), [#allocation6], 4294966656  ;;  %267 = vxpose.xlu0.b32.start.end [1/1] (short) (narrow) %v266_v0, 16  ;;  %v299_v1 = vld [vmem:[%s1453_s1] sm:$0xff]  ;;  %vm421_vm4 = vcmask 1045504   ;;  %s1103_s15 = smov 8  }
  0x59   : > { %836 = vmatprep.subr.mxu0 %v299_v1  ;;  %v812_v4 = vld [vmem:[%s1454_s2] ss:$0 sm:$0xff]  ;;  %s1104_s11 = smov 32   ;;  %vm455_vm5 = vcmask 1044480   ;;  %s1105_s12 = smov 12   ;;  %vm478_vm6 = vcmask 1042432  }
  0x5a   : > { %837 = vmatpush3.msra.mxu0 %v299_v1  ;;  %s1106_s10 = smov 16   ;;  %v544_v57 = vld [vmem:[#allocation5] sm:$0xff]  ;;  %v545_v58 = vld [vmem:[#allocation5 + $0x8] sm:$0xff]  ;;  %s1107_s29 = smov 20   ;;  %vm490_vm7 = vcmask 1041408   ;;  %v546_v63 = vld [vmem:[#allocation5 + $0x10] sm:$0xff] }
  0x5b   : > { %v854_v59 = vpack.c.bf16 %v545_v58, %v544_v57  ;;  %v547_v0 = vld [vmem:[#allocation5 + $0x18] sm:$0xff]  ;;  %s1108_s13 = smov 24   ;;  %s1109_s28 = smov 28   ;;  %vm521_vm8 = vcmask 31744   ;;  %vm526_vm9 = vcmask 97280   ;;  %vm529_vm10 = vcmask 130048  }
  0x5c   : > { %v858_v1 = vpack.c.bf16 %v547_v0, %v546_v63  ;;  %vm532_vm11 = vcmask 162816   ;;  %vm535_vm12 = vcmask 195584   ;;  %vm538_vm13 = vcmask 228352   ;;  %s810_s17 = sshll.u32 %s1279_s16, 4  ;;  %s825_s26 = sshll.u32 %s1164_s22, 8 }
  0x5d   : > { %855 = vmatprep.subr.bf16.mxu1 %v854_v59  ;;  %vm541_vm14 = vcmask 261120   ;;  %vm549_vm15 = vcmask 293888   ;;  %s258_s23 = scalar_lea.vmem [#allocation7], %s810_s17  ;;  %s1375_s6 = scalar_lea.hbm %s1456_s4, %s825_s26 }
  0x5e   : > { %857 = vmatpush3.bf16.msra.mxu1 %v854_v59  ;;  %s673_s27 = sshll.u32 %s258_s23, 4  ;;  %s1370_s27 = int_to_ptr.vmem [resolvable:$true] %s673_s27 }
  0x5f   : > { %859 = vmatprep.subr.bf16.mxu1 %v858_v1 }
  0x62   : > { %861 = vmatpush3.bf16.msra.mxu1 %v858_v1 }
  0xd8   : > { %v283_v2 = vpop.trf.xlu0 }
  0xd9   : > { %838 = vmatprep.mubr.msk.f32.mxu0 %vm307_vm0, %v283_v2 }
  0xdc   : > { %v284_v3 = vpop.trf.xlu0 }
  0xdd   : > { %839 = vmatmul.mubr.msk.f32.vlgmr.msra.gmra.mrb[0].mxu0 %vm307_vm0, %v284_v3 }
 0x1b0   : > { %v840_v5 = vpop.f32.mrb[0].mxu0 }
 0x1b1   : > { %v386_v6 = vadd.f32 %v840_v5, %v812_v4  ;;  %v380_v7 = vpop.f32.mrb[1].mxu0 }
 0x1b2   : > { %v381_v8 = vadd.f32 %v812_v4, %v380_v7  ;;  %v548_v4 = vld [vmem:[#allocation5 + $0x20] sm:$0xf] }
 0x1b3   : > { %v393_v9 = vrot.slane %v386_v6, 4  ;;  %v402_v10 = vrot.slane %v386_v6, 7  ;;  %849 = vmatprep.subr.msk.mxu1 %vm391_vm1, %v548_v4 }
 0x1b4   : > { %v392_v11 = vrot.slane %v381_v8, 4  ;;  %v401_v12 = vrot.slane %v381_v8, 7  ;;  %850 = vmatpush3.msk.msra.mxu1 %vm391_vm1, %v548_v4 }
 0x1b5   : > { %v1300_v13 = vsel %vm391_vm1, %v393_v9, 0.0  ;;  %v408_v28 = vsel %vm400_vm2, %v402_v10, -inf }
 0x1b6   : > { %v1303_v14 = vsel %vm391_vm1, %v392_v11, %v393_v9  ;;  %v1306_v15 = vsel %vm391_vm1, 0.0, %v392_v11  ;;  %v403_v16 = vsel %vm400_vm2, %v401_v12, %v402_v10  ;;  %v407_v17 = vsel %vm400_vm2, -inf, %v401_v12 }
 0x1b7   : > { %v434_v18 = vrot.slane %v1303_v14, 1  ;;  %v436_v19 = vrot.slane %v1300_v13, 1  ;;  %v412_v20 = vrot.slane %v407_v17, 1  ;;  %v413_v21 = vrot.slane %v403_v16, 1 }
 0x1b8   : > { %v422_v22 = vrot.slane %v407_v17, 2  ;;  %v423_v23 = vrot.slane %v403_v16, 2  ;;  %v433_v25 = vrot.slane %v1306_v15, 1  ;;  %v444_v26 = vrot.slane %v1306_v15, 2 }
 0x1b9   : > { %v437_v24 = vsel %vm411_vm3, %v434_v18, %v436_v19  ;;  %v445_v27 = vrot.slane %v1303_v14, 2  ;;  %v414_v29 = vsel %vm411_vm3, %v412_v20, %v413_v21  ;;  %v415_v33 = vrot.slane %v408_v28, 1 }
 0x1ba   : > { %440 = vrot.lane.b32.xlu1 %v437_v24, %s1102_s7  ;;  %v424_v30 = vsel %vm421_vm4, %v422_v22, %v423_v23  ;;  %v435_v31 = vsel %vm411_vm3, %v433_v25, %v434_v18  ;;  %v419_v32 = vmax.f32 %v407_v17, %v414_v29  ;;  %v447_v36 = vrot.slane %v1300_v13, 2 }
 0x1bb   : > { %438 = vrot.lane.b32.xlu0 %v435_v31, %s1102_s7  ;;  %v446_v34 = vsel %vm421_vm4, %v444_v26, %v445_v27  ;;  %v425_v37 = vrot.slane %v408_v28, 2  ;;  %v456_v39 = vrot.slane %v1306_v15, 3  ;;  %v457_v40 = vrot.slane %v1303_v14, 3  ;;  %s655_s7 = scalar_lea.sflag [#allocation4], %s1279_s16 }
 0x1bc   : > { %v429_v35 = vmax.f32 %v419_v32, %v424_v30  ;;  %v448_v38 = vsel %vm421_vm4, %v445_v27, %v447_v36  ;;  %v416_v41 = vsel %vm411_vm3, %v413_v21, %v415_v33  ;;  %v459_v46 = vrot.slane %v1300_v13, 3 }
 0x1bd   : > { %v420_v42 = vmax.f32 %v403_v16, %v416_v41  ;;  %v426_v43 = vsel %vm421_vm4, %v423_v23, %v425_v37  ;;  %v458_v45 = vsel %vm455_vm5, %v456_v39, %v457_v40  ;;  %v467_v48 = vrot.slane %v1306_v15, 4 }
 0x1be   : > { %449 = vrot.lane.b32.xlu1 %v446_v34, %s1103_s15  ;;  %v460_v47 = vsel %vm455_vm5, %v457_v40, %v459_v46  ;;  %v468_v49 = vrot.slane %v1303_v14, 4  ;;  %v470_v51 = vrot.slane %v1300_v13, 4  ;;  %v479_v53 = vrot.slane %v1306_v15, 5 }
 0x1bf   : > { %515 = vrot.lane.b32.xlu0 %v429_v35, %s1104_s11  ;;  %v430_v44 = vmax.f32 %v420_v42, %v426_v43  ;;  %v480_v54 = vrot.slane %v1303_v14, 5  ;;  %v482_v56 = vrot.slane %v1300_v13, 5  ;;  %v491_v61 = vrot.slane %v1306_v15, 6 }
 0x1c0   : > { %v469_v50 = vsel %vm391_vm1, %v467_v48, %v468_v49  ;;  %v471_v52 = vsel %vm391_vm1, %v468_v49, %v470_v51  ;;  %v492_v62 = vrot.slane %v1303_v14, 6  ;;  %v494_v3 = vrot.slane %v1300_v13, 6 }
 0x1c1   : > { %v481_v55 = vsel %vm478_vm6, %v479_v53, %v480_v54  ;;  %v483_v60 = vsel %vm478_vm6, %v480_v54, %v482_v56  ;;  %v502_v6 = vrot.slane %v1306_v15, 7  ;;  %v503_v7 = vrot.slane %v1303_v14, 7 }
 0x1c2   : > { %451 = vrot.lane.b32.xlu1 %v448_v38, %s1103_s15  ;;  %v493_v2 = vsel %vm490_vm7, %v491_v61, %v492_v62  ;;  %v495_v5 = vsel %vm490_vm7, %v492_v62, %v494_v3  ;;  %v505_v9 = vrot.slane %v1300_v13, 7 }
 0x1c3   : > { %v504_v8 = vsel %vm400_vm2, %v502_v6, %v503_v7 }
 0x1c4   : > { %v506_v10 = vsel %vm400_vm2, %v503_v7, %v505_v9 }
 0x1c6   : > { %461 = vrot.lane.b32.xlu1 %v458_v45, %s1105_s12 }
 0x1ca   : > { %463 = vrot.lane.b32.xlu1 %v460_v47, %s1105_s12  ;;  %s1110_s12 = smov [#allocation7]  }
 0x1ce   : > { %472 = vrot.lane.b32.xlu1 %v469_v50, %s1106_s10 }
 0x1d2   : > { %474 = vrot.lane.b32.xlu1 %v471_v52, %s1106_s10  ;;  %s998_s10 = sshll.u32 %s1110_s12, 4  ;;  %s999_s10 = int_to_ptr.vmem [resolvable:$false] %s998_s10 }
 0x1d3   : > { %p1001_p10 = scmp.lt.s32.totalorder %s1370_s27, %s999_s10 }
 0x1d6   : > { %484 = vrot.lane.b32.xlu1 %v481_v55, %s1107_s29 }
 0x1da   : > { %486 = vrot.lane.b32.xlu1 %v483_v60, %s1107_s29  ;;  %s1000_s29 = scalar_lea.vmem %s999_s10, 512 }
 0x1de   : > { %496 = vrot.lane.b32.xlu1 %v493_v2, %s1108_s13 }
 0x1e2   : > { %498 = vrot.lane.b32.xlu1 %v495_v5, %s1108_s13 }
 0x1e6   : > { %507 = vrot.lane.b32.xlu1 %v504_v8, %s1109_s28 }
 0x1ea   : > { %509 = vrot.lane.b32.xlu1 %v506_v10, %s1109_s28 }
 0x1ee   : > { %517 = vrot.lane.b32.xlu1 %v430_v44, %s1104_s11  ;;  %s994_s11 = scalar_lea.vmem %s1370_s27, 256 }
 0x1ef   : > { %p995_p4 = scmp.ne.s32.totalorder %s1370_s27, %s994_s11  ;;  %p1002_p13 = scmp.lt.s32.totalorder %s1000_s29, %s994_s11 }
 0x1f1   : > { %p996_p6 = pnand %p995_p4, %p1234_p12  ;;  %p1003_p3 = por %p1002_p13, %p1001_p10 }
 0x1f3   : > { %p997_p8 = pneg %p996_p6 }
 0x1f5   : > { %p1004_p7 = pnand %p1003_p3, %p997_p8 }
 0x22c   : > { %v441_v11 = vpop.permute.xlu1 %440 }
 0x22d   : > { %v439_v23 = vpop.permute.xlu0 %438  ;;  %v523_v33 = vsel %vm521_vm8, %v1303_v14, %v441_v11 }
 0x22e   : > { %v522_v13 = vsel %vm521_vm8, %v1306_v15, %v439_v23 }
 0x230   : > { %v450_v12 = vpop.permute.xlu1 %449 }
 0x231   : > { %v524_v25 = vsel %vm307_vm0, %v522_v13, %v450_v12  ;;  %v516_v15 = vpop.permute.xlu0 %515 }
 0x234   : > { %v452_v16 = vpop.permute.xlu1 %451 }
 0x235   : > { %v525_v35 = vsel %vm307_vm0, %v523_v33, %v452_v16 }
 0x238   : > { %v462_v17 = vpop.permute.xlu1 %461 }
 0x239   : > { %v527_v27 = vsel %vm526_vm9, %v524_v25, %v462_v17 }
 0x23c   : > { %v464_v18 = vpop.permute.xlu1 %463 }
 0x23d   : > { %v528_v36 = vsel %vm526_vm9, %v525_v35, %v464_v18 }
 0x240   : > { %v473_v19 = vpop.permute.xlu1 %472 }
 0x241   : > { %v530_v28 = vsel %vm529_vm10, %v527_v27, %v473_v19 }
 0x244   : > { %v475_v20 = vpop.permute.xlu1 %474 }
 0x245   : > { %v531_v38 = vsel %vm529_vm10, %v528_v36, %v475_v20 }
 0x248   : > { %v485_v21 = vpop.permute.xlu1 %484 }
 0x249   : > { %v533_v29 = vsel %vm532_vm11, %v530_v28, %v485_v21 }
 0x24c   : > { %v487_v22 = vpop.permute.xlu1 %486 }
 0x24d   : > { %v534_v39 = vsel %vm532_vm11, %v531_v38, %v487_v22 }
 0x250   : > { %v497_v24 = vpop.permute.xlu1 %496 }
 0x251   : > { %v536_v30 = vsel %vm535_vm12, %v533_v29, %v497_v24 }
 0x254   : > { %v499_v26 = vpop.permute.xlu1 %498 }
 0x255   : > { %v537_v40 = vsel %vm535_vm12, %v534_v39, %v499_v26 }
 0x258   : > { %v508_v31 = vpop.permute.xlu1 %507 }
 0x259   : > { %v539_v32 = vsel %vm538_vm13, %v536_v30, %v508_v31 }
 0x25a   : > { %v542_v34 = vsel %vm541_vm14, %v539_v32, %v516_v15 }
 0x25b   : > { %851 = vmatprep.mubr.msk.f32.mxu1 %vm549_vm15, %v542_v34 }
 0x25c   : > { %v510_v37 = vpop.permute.xlu1 %509 }
 0x25d   : > { %v540_v41 = vsel %vm538_vm13, %v537_v40, %v510_v37 }
 0x260   : > { %v518_v42 = vpop.permute.xlu1 %517 }
 0x261   : > { %v543_v14 = vsel %vm541_vm14, %v540_v41, %v518_v42 }
 0x262   : > { %852 = vmatmul.mubr.msk.f32.vlgmr.msra.gmra.mrb[0].mxu1 %vm549_vm15, %v543_v14 }
 0x335   : > { %v853_v43 = vpop.f32.mrb[0].mxu1 }
 0x336   : > { %635 = vst [vmem:[%s258_s23 + $0x8] sm:$0xff] %v853_v43  ;;  %v644_v44 = vmul.f32 %v853_v43, %v853_v43  ;;  %v625_v45 = vpop.f32.mrb[1].mxu1 }
 0x337   : > { %634 = vst [vmem:[%s258_s23] sm:$0xff] %v625_v45  ;;  %v636_v46 = vadd.f32 %v853_v43, %v625_v45  ;;  %v643_v47 = vmul.f32 %v625_v45, %v625_v45 }
 0x338   : > { %1007 = shalt.err (!%p1004_p7)
}
 0x339   : > { %s1008_s13 = scalar_lea.hbm %s1375_s6, 256  ;;  %s1012_s23 = scalar_lea.hbm %s1456_s4, 512 }
 0x33a   : > { %p1009_p9 = scmp.ne.s32.totalorder %s1375_s6, %s1008_s13  ;;  %p1013_p0 = scmp.lt.u32.totalorder %s1375_s6, %s1456_s4 }
 0x33b   : > { %p1014_p1 = scmp.lt.u32.totalorder %s1012_s23, %s1008_s13  ;;  %p1016_p4 = scmp.lt.u32.totalorder %s1008_s13, %s1375_s6 }
 0x33c   : > { %p1010_p2 = pnand %p1009_p9, %p1234_p12 }
 0x33d   : > { %p1015_p11 = por %p1014_p1, %p1013_p0 }
 0x33e   : > { %p1011_p5 = pneg %p1010_p2 }
 0x33f   : > { %p1017_p6 = por %p1016_p4, %p1015_p11 }
 0x341   : > { %p1018_p8 = pnand %p1017_p6, %p1011_p5 }
 0x343   : > { %1021 = shalt.err (!%p1018_p8)
}
 0x344   : > { %s1111_s24 = smov 128   ;;  %v637_v48 = vrot.slane %v636_v46, 4  ;;  %v645_v49 = vadd.f32 %v644_v44, %v643_v47  ;;  %s811_s11 = sshll.u32 %s1279_s16, 1 }
 0x345   : > { %868 = dma.vmem_to_hbm [thread:$0]  (%p1234_p12), %s1370_s27, 256, %s1375_s6, %s655_s7, %s1111_s24, %s1111_s24, %s1103_s15  }
 0x346   : > { %v638_v50 = vadd.f32 %v637_v48, %v636_v46  ;;  %v646_v51 = vrot.slane %v645_v49, 4  ;;  %s822_s12 = sshll.u32 %s1164_s22, 5  ;;  %s265_s10 = scalar_lea.vmem [#allocation8], %s811_s11 }
 0x347   : > { %s689_s29 = sshll.u32 %s265_s10, 4  ;;  %s1407_s6 = scalar_lea.hbm %s1457_s5, %s822_s12  ;;  %s1409_s29 = int_to_ptr.vmem [resolvable:$true] %s689_s29 }
 0x348   : > { %v639_v52 = vrot.slane %v638_v50, 2  ;;  %v647_v53 = vadd.f32 %v646_v51, %v645_v49  ;;  %s660_s7 = scalar_lea.sflag [#allocation9], %s1279_s16  ;;  %s1022_s13 = scalar_lea.vmem %s1409_s29, 32 }
 0x349   : > { %p1023_p10 = scmp.ne.s32.totalorder %s1409_s29, %s1022_s13  ;;  %s1112_s22 = smov [#allocation8]  }
 0x34a   : > { %v640_v54 = vadd.f32 %v639_v52, %v638_v50  ;;  %v648_v55 = vrot.slane %v647_v53, 2  ;;  %s1026_s28 = sshll.u32 %s1112_s22, 4  ;;  %s1027_s28 = int_to_ptr.vmem [resolvable:$false] %s1026_s28 }
 0x34b   : > { %p1024_p13 = pnand %p1023_p10, %p1234_p12  ;;  %s1028_s17 = scalar_lea.vmem %s1027_s28, 64 }
 0x34c   : > { %v641_v56 = vrot.slane %v640_v54, 1  ;;  %v649_v57 = vadd.f32 %v648_v55, %v647_v53  ;;  %p1029_p7 = scmp.lt.s32.totalorder %s1409_s29, %s1027_s28  ;;  %p1030_p9 = scmp.lt.s32.totalorder %s1028_s17, %s1022_s13 }
 0x34d   : > { %p1025_p3 = pneg %p1024_p13 }
 0x34e   : > { %v650_v58 = vrot.slane %v649_v57, 1  ;;  %v642_v59 = vadd.f32 %v641_v56, %v640_v54  ;;  %p1031_p2 = por %p1030_p9, %p1029_p7 }
 0x350   : > { %v651_v60 = vadd.f32 %v650_v58, %v649_v57  ;;  %p1032_p5 = pnand %p1031_p2, %p1025_p3 }
 0x352   : > { %v652_v61 = vsel %vm400_vm2, %v642_v59, %v651_v60 }
 0x353   : > { %653 = vst [vmem:[%s265_s10] sm:$0x3] %v652_v61 }
 0x354   : > { %1035 = shalt.err (!%p1032_p5)
}
 0x355   : > { %s1036_s16 = scalar_lea.hbm %s1407_s6, 32  ;;  %s1040_s14 = scalar_lea.hbm %s1457_s5, 64 }
 0x356   : > { %p1037_p0 = scmp.ne.s32.totalorder %s1407_s6, %s1036_s16  ;;  %p1041_p4 = scmp.lt.u32.totalorder %s1407_s6, %s1457_s5 }
 0x357   : > { %p1042_p6 = scmp.lt.u32.totalorder %s1040_s14, %s1036_s16  ;;  %p1044_p10 = scmp.lt.u32.totalorder %s1036_s16, %s1407_s6 }
 0x358   : > { %p1038_p1 = pnand %p1037_p0, %p1234_p12 }
 0x359   : > { %p1043_p8 = por %p1042_p6, %p1041_p4 }
 0x35a   : > { %p1039_p11 = pneg %p1038_p1 }
 0x35b   : > { %p1045_p13 = por %p1044_p10, %p1043_p8 }
 0x35d   : > { %p1046_p3 = pnand %p1045_p13, %p1039_p11 }
 0x35f   : > { %1049 = shalt.err (!%p1046_p3)
}
 0x360   : > { %869 = dma.vmem_to_hbm [thread:$0]  (%p1234_p12), %s1409_s29, 32, %s1407_s6, %s660_s7  }
 0x361 PF: > { %s701_s12 = sand.u32 1, %s1084_s18   ;;  %p1472_p7 = scmp.ne.s32.totalorder %s1462_s25, 0 }
 0x362   : > { %p1473_p9 = scmp.ge.s32.totalorder %s1096_s21, 2  ;;  %s702_s10 = scalar_lea.sflag [#allocation4], %s701_s12 }
 0x364   : > { %p881_p2 = pnand %p1473_p9, %p1472_p7 }
 0x366   : > { %1075 = dma.done.wait (!%p881_p2), %s702_s10, 256  }
 0x367   : > { %1077 = vsyncadd (!%p881_p2), %s702_s10, 4294967040  ;;  %s711_s15 = scalar_lea.sflag [#allocation9], %s701_s12 }
 0x368   : > { %1079 = dma.done.wait (!%p881_p2), %s711_s15, 32  }
 0x369   : > { %1081 = vsyncadd (!%p881_p2), %s711_s15, 4294967264  ;;  %p23_p12 = scmp.ge.s32.totalorder %s1199_s30, 4   ;;  %s1474_s18 = smov %s1088_s19 }
 0x36a   : > { %s1475_s19 = smov %s1092_s20  ;;  %s1476_s20 = smov %s1230_s8 }
 0x36b   : > { %s1477_s21 = smov %s1199_s30  ;;  %25 = sbr.rel (!%p23_p12) target bundleno = 8 (0x8), region = 102 }
 0x372   :  { %716 = vsyncpa [#allocation3], 1 }
 0x373   :  { %718 = vsyncpa [#allocation3 + $0x1], 1 }
 0x374   :  { %719 = vsyncpa [#allocation6], 1 }
 0x375   :  { %720 = vsyncpa [#allocation4], 1 }
 0x376   :  { %722 = vsyncpa [#allocation4 + $0x1], 1 }
 0x377   :  { %723 = vsyncpa [#allocation9], 1 }
 0x378   :  { %725 = vsyncpa [#allocation9 + $0x1], 1 }

</bundles_post_ra>
